<compile_context>
chip_gen: v6e
topology: v6e:2x2x1
jax: 0.10.0
libtpu: 0.0.40
codegen_flags: <defaults>
</compile_context>

<pallas_src>
import functools

import jax
import jax.numpy as jnp
from jax import lax
from jax.experimental import pallas as pl
from jax.experimental.pallas import tpu as pltpu

NUM_CHANNEL = 64                       # num_channel in the PyTorch module
ATTN_DIM = NUM_CHANNEL // 8            # in_dim // 8 inside SelfAttention
QKV_DIM = 2 * ATTN_DIM + NUM_CHANNEL   # 80: [q | k | v]
LANE = 128
NEG_BIG = -1e30                        # bias for padded logit lanes


def _round_up(x, m):
    return ((x + m - 1) // m) * m


# --------------------------------------------------------------------------
# Kernel helpers (traced inside the Pallas body)
# --------------------------------------------------------------------------
def _conv_attn_relu_block(x2d, pmask, nmask, tb, seq_len,
                          wconv, bconv, wqkv, bqkv, gamma):
    """One Conv1d(k=3,pad=1) -> SelfAttention -> ReLU block.

    x2d:   (M, Cin)  f32, M = tb*seq_len (tb sequences stacked along rows)
    pmask: (M, 1)    f32, 0 on the first row of each sequence
    nmask: (M, 1)    f32, 0 on the last row of each sequence
    wconv: (3*Cin, 64) bf16  (taps stacked [k=0; k=1; k=2] along axis 0)
    bconv: (1, 64)   f32
    wqkv:  (64, 80)  bf16  ([Wq | Wk | Wv] along axis 1)
    bqkv:  (1, 80)   f32
    gamma: scalar    f32
    returns (M, 64) f32
    """
    M, _ = x2d.shape
    # +/-1 row shifts on the XLU; sequence-boundary rows zeroed by the hoisted masks.
    x_prev = pltpu.roll(x2d, shift=1, axis=0) * pmask
    x_next = pltpu.roll(x2d, shift=M - 1, axis=0) * nmask

    # im2col: one K=3*Cin matmul instead of three shifted K=Cin matmuls.
    slab = jnp.concatenate([x_prev, x2d, x_next], axis=-1).astype(jnp.bfloat16)
    h = jnp.dot(slab, wconv, preferred_element_type=jnp.float32) + bconv      # (M, 64)

    # SelfAttention: single lane-dense matmul gives q|k|v.
    qkv = jnp.dot(h.astype(jnp.bfloat16), wqkv,
                  preferred_element_type=jnp.float32) + bqkv                   # (M, 80)
    qkv3 = qkv.reshape(tb, seq_len, QKV_DIM)
    q = qkv3[:, :, :ATTN_DIM].astype(jnp.bfloat16)                             # (tb,L,8)
    k = qkv3[:, :, ATTN_DIM:2 * ATTN_DIM].astype(jnp.bfloat16)                 # (tb,L,8)
    v = qkv3[:, :, 2 * ATTN_DIM:].astype(jnp.bfloat16)                         # (tb,L,64)

    # energy[b, i, j] = <q_i, k_j>   (torch.bmm(proj_query, proj_key))
    energy = jnp.einsum('bid,bjd->bij', q, k,
                        preferred_element_type=jnp.float32)                    # (tb,L,L)
    m = jnp.max(energy, axis=-1, keepdims=True)
    e = jnp.exp(energy - m)                                                    # f32
    denom = jnp.sum(e, axis=-1, keepdims=True)                                 # (tb,L,1)

    # Un-normalized PV matmul (torch.bmm(value, attn^T) == attn @ v channels-last),
    # then one (M, 64) scale by the row-sum reciprocal (EUP) -- no (L, L) divide.
    pv = jnp.einsum('bij,bjd->bid', e.astype(jnp.bfloat16), v,
                    preferred_element_type=jnp.float32)                        # (tb,L,64)
    att = pv.reshape(M, NUM_CHANNEL) * pl.reciprocal(
        denom.reshape(M, 1), approx=True)

    out = gamma * att + h                                                      # gamma*out + x
    return jnp.maximum(out, 0.0)                                               # ReLU


def fused_model_kernel(x_ref, wconv0_ref, bconv0_ref, wqkv0_ref, bqkv0_ref,
                       wconv_r_ref, bconv_r_ref, wqkv_r_ref, bqkv_r_ref,
                       gammas_ref, wlin_ref, blin_ref, out_ref,
                       *, n_rest, tb, seq_len):
    """Whole 'cnn' stack + Linear + log_softmax for TB batch elements."""
    L = seq_len
    M = tb * L
    cin0 = x_ref.shape[-1]
    x2d = x_ref[...].reshape(M, cin0).astype(jnp.float32)

    # Sequence-boundary masks, built ONCE per grid step (hoisted out of the layers).
    if tb == 1:
        pos = jax.lax.broadcasted_iota(jnp.int32, (M, 1), 0)
    else:
        pos = jax.lax.broadcasted_iota(jnp.int32, (tb, L, 1), 1).reshape(M, 1)
    pmask = (pos != 0).astype(jnp.float32)        # row has a valid i-1 neighbour
    nmask = (pos != L - 1).astype(jnp.float32)    # row has a valid i+1 neighbour

    # Layer 0 (input channels Cin0 != 64 in general, so its weights are separate).
    h = _conv_attn_relu_block(x2d, pmask, nmask, tb, L,
                              wconv0_ref[...], bconv0_ref[...],
                              wqkv0_ref[...], bqkv0_ref[...], gammas_ref[0])

    # Remaining layers: Cin = 64, stacked weights.  Static unroll for few layers,
    # fori_loop (bounded live ranges) for deep stacks.
    if n_rest <= 3:
        for i in range(n_rest):
            h = _conv_attn_relu_block(h, pmask, nmask, tb, L,
                                      wconv_r_ref[i], bconv_r_ref[i],
                                      wqkv_r_ref[i], bqkv_r_ref[i],
                                      gammas_ref[i + 1])
    else:
        def body(i, hc):
            return _conv_attn_relu_block(hc, pmask, nmask, tb, L,
                                         wconv_r_ref[i], bconv_r_ref[i],
                                         wqkv_r_ref[i], bqkv_r_ref[i],
                                         gammas_ref[i + 1])
        h = lax.fori_loop(0, n_rest, body, h)

    # Lane-dense fused head: Linear(64 -> n_pad multiple of 128) + log_softmax.
    # Padded lanes carry a -1e30 bias so they contribute 0 to the denominator.
    n_pad = out_ref.shape[-1]
    logits = jnp.dot(h.astype(jnp.bfloat16), wlin_ref[...],
                     preferred_element_type=jnp.float32) + blin_ref[...]       # (M, n_pad)
    mx = jnp.max(logits, axis=-1, keepdims=True)
    s = logits - mx
    lse = jnp.log(jnp.sum(jnp.exp(s), axis=-1, keepdims=True))
    out_ref[...] = (s - lse).reshape(tb, L, n_pad).astype(out_ref.dtype)


# --------------------------------------------------------------------------
# Wrapper
# --------------------------------------------------------------------------
def _vmem_limit_bytes():
    try:
        cap = int(pltpu.get_tpu_info().vmem_capacity_bytes)
        return int(min(cap - 8 * 1024 * 1024, 112 * 1024 * 1024))
    except Exception:
        return 56 * 1024 * 1024   # safe on v5e / v6e / v7x


def _choose_tb(b, l, cin0, n_pad):
    """Largest TB dividing B that keeps >=2 grid steps (megacore) and keeps the
    per-step (TB, L, L) attention temporaries comfortably inside VMEM."""
    budget = 24 * 1024 * 1024
    best = 1
    for tb in range(1, b + 1):
        if b % tb:
            continue
        if b >= 2 and b // tb < 2:
            continue
        attn_bytes = 10 * tb * l * l                      # energy + exp + bf16 copy
        act_bytes = 4 * tb * l * (3 * max(cin0, NUM_CHANNEL)
                                  + 2 * NUM_CHANNEL + QKV_DIM + n_pad)
        if attn_bytes + act_bytes > budget:
            continue
        best = tb
    return best


def fused_cnn_forward(x, params):
    """x: (B, L, Cin0) f32 -> (B, L, n_tags) f32 log-probabilities."""
    B, L, Cin0 = x.shape
    n_layers = params["n_layers"]
    n_rest = n_layers - 1
    n_tags = params["n_tags"]
    w_lin = params["w_lin"]                    # (64, n_pad) bf16, zero-padded columns
    b_lin = params["b_lin"]                    # (1, n_pad)  f32, padded lanes = -1e30
    n_pad = w_lin.shape[1]
    layer0 = params["layer0"]

    if n_rest == 0:
        # Dummy stacked weights; the unrolled loop never reads them.
        wconv_r = jnp.zeros((1, 3 * NUM_CHANNEL, NUM_CHANNEL), jnp.bfloat16)
        bconv_r = jnp.zeros((1, 1, NUM_CHANNEL), jnp.float32)
        wqkv_r = jnp.zeros((1, NUM_CHANNEL, QKV_DIM), jnp.bfloat16)
        bqkv_r = jnp.zeros((1, 1, QKV_DIM), jnp.float32)
    else:
        rest = params["layers_rest"]
        wconv_r, bconv_r = rest["wconv"], rest["bconv"]
        wqkv_r, bqkv_r = rest["wqkv"], rest["bqkv"]

    tb = _choose_tb(B, L, Cin0, n_pad)
    grid = (B // tb,)

    def full(arr):
        shp = arr.shape
        return pl.BlockSpec(shp, lambda b, n=len(shp): (0,) * n)

    grid_spec = pltpu.PrefetchScalarGridSpec(
        num_scalar_prefetch=0,
        grid=grid,
        in_specs=[
            pl.BlockSpec((tb, L, Cin0), lambda b: (b, 0, 0)),        # x (TB sequences)
            full(layer0["wconv"]), full(layer0["bconv"]),            # layer 0 conv
            full(layer0["wqkv"]), full(layer0["bqkv"]),              # layer 0 attn
            full(wconv_r), full(bconv_r),                            # layers 1.. conv
            full(wqkv_r), full(bqkv_r),                              # layers 1.. attn
            pl.BlockSpec(memory_space=pltpu.MemorySpace.SMEM),       # gammas (scalars)
            full(w_lin), full(b_lin),                                # padded head
        ],
        out_specs=pl.BlockSpec((tb, L, n_pad), lambda b: (b, 0, 0)),  # lane-dense out
    )
    kernel = functools.partial(fused_model_kernel, n_rest=n_rest, tb=tb, seq_len=L)
    out_padded = pl.pallas_call(
        kernel,
        out_shape=jax.ShapeDtypeStruct((B, L, n_pad), jnp.float32),
        grid_spec=grid_spec,
        compiler_params=pltpu.CompilerParams(
            dimension_semantics=("parallel",),
            vmem_limit_bytes=_vmem_limit_bytes()),
    )(x, layer0["wconv"], layer0["bconv"], layer0["wqkv"], layer0["bqkv"],
      wconv_r, bconv_r, wqkv_r, bqkv_r,
      params["gammas"], w_lin, b_lin)
    return out_padded[..., :n_tags]


def rnn_model_forward(params, sentences, features):
    """Mirrors RNNModel.forward for rnn_type='cnn'.

    sentences: (B, L) int32, features: (B, L, feat_dim) float32.
    Returns (B, L, n_tags) log-probabilities.
    """
    # Embedding lookup + concat: plain-JAX glue (gather has no cheap Pallas win here).
    emb = jnp.take(params["embedding"], sentences, axis=0)          # (B, L, E)
    x = jnp.concatenate([emb, features], axis=-1).astype(jnp.float32)
    return fused_cnn_forward(x, params)


# --------------------------------------------------------------------------
# Pure-JAX reference (mirrors the kernel's bf16 matmul policy) for validation
# --------------------------------------------------------------------------
def reference_forward(params, sentences, features):
    emb = jnp.take(params["embedding"], sentences, axis=0)
    x = jnp.concatenate([emb, features], axis=-1).astype(jnp.float32)
    n_layers = params["n_layers"]
    n_tags = params["n_tags"]

    def layer(x, wconv, bconv, wqkv, bqkv, gamma):
        xp = jnp.pad(x, ((0, 0), (1, 1), (0, 0)))
        slab = jnp.concatenate([xp[:, :-2], xp[:, 1:-1], xp[:, 2:]], axis=-1)
        h = jnp.einsum('blc,cd->bld', slab.astype(jnp.bfloat16), wconv,
                       preferred_element_type=jnp.float32) + bconv
        qkv = jnp.einsum('bld,de->ble', h.astype(jnp.bfloat16), wqkv,
                         preferred_element_type=jnp.float32) + bqkv
        q = qkv[..., :ATTN_DIM]
        k = qkv[..., ATTN_DIM:2 * ATTN_DIM]
        v = qkv[..., 2 * ATTN_DIM:]
        energy = jnp.einsum('bid,bjd->bij', q, k)
        attn = jax.nn.softmax(energy, axis=-1)
        att = jnp.einsum('bij,bjd->bid', attn, v)
        return jnp.maximum(gamma * att + h, 0.0)

    gammas = params["gammas"]
    h = layer(x, params["layer0"]["wconv"], params["layer0"]["bconv"],
              params["layer0"]["wqkv"], params["layer0"]["bqkv"], gammas[0])
    if params["layers_rest"] is not None:
        rest = params["layers_rest"]
        for i in range(n_layers - 1):
            h = layer(h, rest["wconv"][i], rest["bconv"][i],
                      rest["wqkv"][i], rest["bqkv"][i], gammas[i + 1])
    logits = jnp.einsum('bld,dn->bln', h.astype(jnp.bfloat16), params["w_lin"],
                        preferred_element_type=jnp.float32) + params["b_lin"]
    return jax.nn.log_softmax(logits, axis=-1)[..., :n_tags]


# --------------------------------------------------------------------------
# Deterministic parameter init (shapes follow the PyTorch __init__)
# --------------------------------------------------------------------------
def init_params(key, vocab, emb_dim, feat_dim, n_tags, n_layers):
    def uniform(k, shape, fan_in):
        bound = 1.0 / jnp.sqrt(jnp.float32(fan_in))
        return jax.random.uniform(k, shape, jnp.float32, -bound, bound)

    keys = iter(jax.random.split(key, 4 + 8 * n_layers))
    params = {
        "embedding": jax.random.normal(next(keys), (vocab, emb_dim), jnp.float32),
        "n_layers": n_layers,
        "n_tags": n_tags,
    }

    c_in = emb_dim + feat_dim
    wconvs, bconvs, wqkvs, bqkvs = [], [], [], []
    for _ in range(n_layers):
        # Conv1d(c_in, 64, k=3): PyTorch weight (64, c_in, 3); stored im2col-style
        # as (3*c_in, 64), rows = [tap k=0 ; k=1 ; k=2].
        wconv = uniform(next(keys), (3, c_in, NUM_CHANNEL), c_in * 3)
        bconv = uniform(next(keys), (1, NUM_CHANNEL), c_in * 3)
        # SelfAttention 1x1 convs on 64 channels, fused as [Wq | Wk | Wv] -> (64, 80).
        wq = uniform(next(keys), (NUM_CHANNEL, ATTN_DIM), NUM_CHANNEL)
        bq = uniform(next(keys), (1, ATTN_DIM), NUM_CHANNEL)
        wk = uniform(next(keys), (NUM_CHANNEL, ATTN_DIM), NUM_CHANNEL)
        bk = uniform(next(keys), (1, ATTN_DIM), NUM_CHANNEL)
        wv = uniform(next(keys), (NUM_CHANNEL, NUM_CHANNEL), NUM_CHANNEL)
        bv = uniform(next(keys), (1, NUM_CHANNEL), NUM_CHANNEL)
        wconvs.append(wconv.reshape(3 * c_in, NUM_CHANNEL).astype(jnp.bfloat16))
        bconvs.append(bconv)
        wqkvs.append(jnp.concatenate([wq, wk, wv], axis=1).astype(jnp.bfloat16))
        bqkvs.append(jnp.concatenate([bq, bk, bv], axis=1))
        c_in = NUM_CHANNEL

    params["layer0"] = {"wconv": wconvs[0], "bconv": bconvs[0],
                        "wqkv": wqkvs[0], "bqkv": bqkvs[0]}
    if n_layers > 1:
        params["layers_rest"] = {
            "wconv": jnp.stack(wconvs[1:]),            # (n_layers-1, 192, 64) bf16
            "bconv": jnp.stack(bconvs[1:]),            # (n_layers-1, 1, 64)   f32
            "wqkv": jnp.stack(wqkvs[1:]),              # (n_layers-1, 64, 80)  bf16
            "bqkv": jnp.stack(bqkvs[1:]),              # (n_layers-1, 1, 80)   f32
        }
    else:
        params["layers_rest"] = None

    # nn.Parameter(torch.zeros(1)) per SelfAttention -> one scalar per layer, SMEM.
    params["gammas"] = jnp.zeros((n_layers,), jnp.float32)

    # Linear(64 * num_direction=1, n_tags), lane-dense padded to a multiple of 128.
    n_pad = _round_up(max(n_tags, 1), LANE)
    w = uniform(next(keys), (NUM_CHANNEL, n_tags), NUM_CHANNEL)
    b = uniform(next(keys), (1, n_tags), NUM_CHANNEL)
    w_pad = jnp.zeros((NUM_CHANNEL, n_pad), jnp.float32).at[:, :n_tags].set(w)
    b_pad = jnp.full((1, n_pad), NEG_BIG, jnp.float32).at[:, :n_tags].set(b)
    params["w_lin"] = w_pad.astype(jnp.bfloat16)
    params["b_lin"] = b_pad
    return params


# --------------------------------------------------------------------------
if __name__ == "__main__":
    B, L = 2, 16
    vocab, emb_dim, feat_dim = 50, 24, 8
    n_tags, n_layers = 8, 2

    key = jax.random.PRNGKey(0)
    k_params, k_sent, k_feat = jax.random.split(key, 3)

    params = init_params(k_params, vocab, emb_dim, feat_dim, n_tags, n_layers)
    # PyTorch init has gamma=0 (attention branch off); use a nonzero gamma here so
    # the self-attention path is actually exercised by the check below.
    params["gammas"] = jnp.full((n_layers,), 0.5, jnp.float32)

    sentences = jax.random.randint(k_sent, (B, L), 0, vocab, dtype=jnp.int32)
    features = jax.random.normal(k_feat, (B, L, feat_dim), jnp.float32)

    fwd = jax.jit(functools.partial(rnn_model_forward, params))
    out = fwd(sentences, features)
    jax.block_until_ready(out)

    assert out.shape == (B, L, n_tags), out.shape
    assert bool(jnp.all(jnp.isfinite(out)))
    # log_softmax rows should sum to ~1 in probability space.
    assert bool(jnp.all(jnp.abs(jnp.sum(jnp.exp(out), axis=-1) - 1.0) < 1e-2))
    # Parity vs. the pure-JAX reference (same bf16 matmul policy).
    ref = reference_forward(params, sentences, features)
    assert bool(jnp.max(jnp.abs(out - ref)) < 5e-2), float(jnp.max(jnp.abs(out - ref)))
    print("KERNEL_OK")
</pallas_src>

<mosaic_0001>
module attributes {stable_mosaic.version = 11 : i64} {
  func.func @fused_model_kernel(%arg0: i32, %arg1: memref<1x16x32xf32, #tpu.memory_space<vmem>>, %arg2: memref<96x64xbf16, #tpu.memory_space<vmem>>, %arg3: memref<1x64xf32, #tpu.memory_space<vmem>>, %arg4: memref<64x80xbf16, #tpu.memory_space<vmem>>, %arg5: memref<1x80xf32, #tpu.memory_space<vmem>>, %arg6: memref<1x192x64xbf16, #tpu.memory_space<vmem>>, %arg7: memref<1x1x64xf32, #tpu.memory_space<vmem>>, %arg8: memref<1x64x80xbf16, #tpu.memory_space<vmem>>, %arg9: memref<1x1x80xf32, #tpu.memory_space<vmem>>, %arg10: memref<2xf32, #tpu.memory_space<smem>>, %arg11: memref<64x128xbf16, #tpu.memory_space<vmem>>, %arg12: memref<1x128xf32, #tpu.memory_space<vmem>>, %arg13: memref<1x16x128xf32, #tpu.memory_space<vmem>>) attributes {dimension_semantics = [#tpu.dimension_semantics<parallel>], iteration_bounds = array<i64: 2>, scalar_prefetch = 0 : i64, scratch_operands = 0 : i64, tpu.core_type = #tpu.core_type<tc>, window_params = [{transform_indices = @transform_0, window_bounds = array<i64: 1, 16, 32>}, {pipeline_mode = #tpu.pipeline_mode<synchronous>, transform_indices = @transform_1, window_bounds = array<i64: 96, 64>}, {pipeline_mode = #tpu.pipeline_mode<synchronous>, transform_indices = @transform_2, window_bounds = array<i64: 1, 64>}, {pipeline_mode = #tpu.pipeline_mode<synchronous>, transform_indices = @transform_3, window_bounds = array<i64: 64, 80>}, {pipeline_mode = #tpu.pipeline_mode<synchronous>, transform_indices = @transform_4, window_bounds = array<i64: 1, 80>}, {pipeline_mode = #tpu.pipeline_mode<synchronous>, transform_indices = @transform_5, window_bounds = array<i64: 1, 192, 64>}, {pipeline_mode = #tpu.pipeline_mode<synchronous>, transform_indices = @transform_6, window_bounds = array<i64: 1, 1, 64>}, {pipeline_mode = #tpu.pipeline_mode<synchronous>, transform_indices = @transform_7, window_bounds = array<i64: 1, 64, 80>}, {pipeline_mode = #tpu.pipeline_mode<synchronous>, transform_indices = @transform_8, window_bounds = array<i64: 1, 1, 80>}, {transform_indices = @transform_9, window_bounds = array<i64: 2>}, {pipeline_mode = #tpu.pipeline_mode<synchronous>, transform_indices = @transform_10, window_bounds = array<i64: 64, 128>}, {pipeline_mode = #tpu.pipeline_mode<synchronous>, transform_indices = @transform_11, window_bounds = array<i64: 1, 128>}, {transform_indices = @transform_12, window_bounds = array<i64: 1, 16, 128>}]} {
    %c0 = arith.constant 0 : index
    %c0_0 = arith.constant 0 : index
    %c0_1 = arith.constant 0 : index
    %0 = vector.load %arg1[%c0, %c0_0, %c0_1] : memref<1x16x32xf32, #tpu.memory_space<vmem>>, vector<1x16x32xf32>
    %1 = vector.shape_cast %0 : vector<1x16x32xf32> to vector<16x32xf32>
    %2 = tpu.iota {dimensions = array<i32: 0>} : vector<16x1xi32>
    %c0_i32 = arith.constant 0 : i32
    %3 = vector.broadcast %c0_i32 : i32 to vector<16x1xi32>
    %4 = arith.cmpi ne, %2, %3 : vector<16x1xi32>
    %5 = arith.extui %4 : vector<16x1xi1> to vector<16x1xi32>
    %6 = arith.sitofp %5 : vector<16x1xi32> to vector<16x1xf32>
    %c15_i32 = arith.constant 15 : i32
    %7 = vector.broadcast %c15_i32 : i32 to vector<16x1xi32>
    %8 = arith.cmpi ne, %2, %7 : vector<16x1xi32>
    %9 = arith.extui %8 : vector<16x1xi1> to vector<16x1xi32>
    %10 = arith.sitofp %9 : vector<16x1xi32> to vector<16x1xf32>
    %c0_2 = arith.constant 0 : index
    %c0_3 = arith.constant 0 : index
    %11 = vector.load %arg2[%c0_2, %c0_3] : memref<96x64xbf16, #tpu.memory_space<vmem>>, vector<96x64xbf16>
    %c0_4 = arith.constant 0 : index
    %c0_5 = arith.constant 0 : index
    %12 = vector.load %arg3[%c0_4, %c0_5] : memref<1x64xf32, #tpu.memory_space<vmem>>, vector<1x64xf32>
    %c0_6 = arith.constant 0 : index
    %c0_7 = arith.constant 0 : index
    %13 = vector.load %arg4[%c0_6, %c0_7] : memref<64x80xbf16, #tpu.memory_space<vmem>>, vector<64x80xbf16>
    %c0_8 = arith.constant 0 : index
    %c0_9 = arith.constant 0 : index
    %14 = vector.load %arg5[%c0_8, %c0_9] : memref<1x80xf32, #tpu.memory_space<vmem>>, vector<1x80xf32>
    %c0_10 = arith.constant 0 : index
    %15 = memref.load %arg10[%c0_10] : memref<2xf32, #tpu.memory_space<smem>>
    %c1_i32 = arith.constant 1 : i32
    %16 = tpu.dynamic_rotate %1 by %c1_i32 dim 0 : vector<16x32xf32>, i32 -> vector<16x32xf32>
    %17 = vector.broadcast %6 : vector<16x1xf32> to vector<16x32xf32>
    %18 = arith.mulf %16, %17 : vector<16x32xf32>
    %c15_i32_11 = arith.constant 15 : i32
    %19 = tpu.dynamic_rotate %1 by %c15_i32_11 dim 0 : vector<16x32xf32>, i32 -> vector<16x32xf32>
    %20 = vector.broadcast %10 : vector<16x1xf32> to vector<16x32xf32>
    %21 = arith.mulf %19, %20 : vector<16x32xf32>
    %22 = tpu.concatenate %18, %1, %21 in 1 : vector<16x32xf32>, vector<16x32xf32>, vector<16x32xf32> -> vector<16x96xf32>
    %23 = arith.truncf %22 : vector<16x96xf32> to vector<16x96xbf16>
    %cst = arith.constant dense<0.000000e+00> : vector<16x64xf32>
    %24 = tpu.matmul %23, %11, %cst {dimension_numbers = #tpu.dot_dimension_numbers<[1], [0], [0], [1], [0, 0, 1, 1], [], []>} : vector<16x96xbf16>, vector<96x64xbf16>, vector<16x64xf32> -> vector<16x64xf32>
    %25 = vector.broadcast %12 : vector<1x64xf32> to vector<16x64xf32>
    %26 = arith.addf %24, %25 : vector<16x64xf32>
    %27 = arith.truncf %26 : vector<16x64xf32> to vector<16x64xbf16>
    %cst_12 = arith.constant dense<0.000000e+00> : vector<16x80xf32>
    %28 = tpu.matmul %27, %13, %cst_12 {dimension_numbers = #tpu.dot_dimension_numbers<[1], [0], [0], [1], [0, 0, 1, 1], [], []>} : vector<16x64xbf16>, vector<64x80xbf16>, vector<16x80xf32> -> vector<16x80xf32>
    %29 = vector.broadcast %14 : vector<1x80xf32> to vector<16x80xf32>
    %30 = arith.addf %28, %29 : vector<16x80xf32>
    %31 = vector.shape_cast %30 : vector<16x80xf32> to vector<1x16x80xf32>
    %32 = vector.extract_strided_slice %31 {offsets = [0, 0, 0], sizes = [1, 16, 8], strides = [1, 1, 1]} : vector<1x16x80xf32> to vector<1x16x8xf32>
    %33 = arith.truncf %32 : vector<1x16x8xf32> to vector<1x16x8xbf16>
    %34 = vector.extract_strided_slice %31 {offsets = [0, 0, 8], sizes = [1, 16, 8], strides = [1, 1, 1]} : vector<1x16x80xf32> to vector<1x16x8xf32>
    %35 = arith.truncf %34 : vector<1x16x8xf32> to vector<1x16x8xbf16>
    %36 = vector.extract_strided_slice %31 {offsets = [0, 0, 16], sizes = [1, 16, 64], strides = [1, 1, 1]} : vector<1x16x80xf32> to vector<1x16x64xf32>
    %37 = arith.truncf %36 : vector<1x16x64xf32> to vector<1x16x64xbf16>
    "tpu.trace_start"() <{level = 10 : i32, message = "bid,bjd->bij"}> : () -> ()
    %cst_13 = arith.constant dense<0.000000e+00> : vector<1x16x16xf32>
    %38 = tpu.matmul %33, %35, %cst_13 {dimension_numbers = #tpu.dot_dimension_numbers<[2], [2], [1], [1], [0, 0, 0, 1, 1, 1], [0], [0]>} : vector<1x16x8xbf16>, vector<1x16x8xbf16>, vector<1x16x16xf32> -> vector<1x16x16xf32>
    "tpu.trace_stop"() : () -> ()
    %cst_14 = arith.constant dense<0xFF800000> : vector<1x16xf32>
    %39 = vector.multi_reduction <maximumf>, %38, %cst_14 [2] : vector<1x16x16xf32> to vector<1x16xf32>
    %40 = vector.shape_cast %39 : vector<1x16xf32> to vector<1x16x1xf32>
    %41 = vector.broadcast %40 : vector<1x16x1xf32> to vector<1x16x16xf32>
    %42 = arith.subf %38, %41 : vector<1x16x16xf32>
    %43 = math.exp %42 : vector<1x16x16xf32>
    %cst_15 = arith.constant dense<0.000000e+00> : vector<1x16xf32>
    %44 = vector.multi_reduction <add>, %43, %cst_15 [2] : vector<1x16x16xf32> to vector<1x16xf32>
    %45 = vector.shape_cast %44 : vector<1x16xf32> to vector<1x16x1xf32>
    %46 = arith.truncf %43 : vector<1x16x16xf32> to vector<1x16x16xbf16>
    "tpu.trace_start"() <{level = 10 : i32, message = "bij,bjd->bid"}> : () -> ()
    %cst_16 = arith.constant dense<0.000000e+00> : vector<1x16x64xf32>
    %47 = tpu.matmul %46, %37, %cst_16 {dimension_numbers = #tpu.dot_dimension_numbers<[2], [1], [1], [2], [0, 0, 0, 1, 1, 2], [0], [0]>} : vector<1x16x16xbf16>, vector<1x16x64xbf16>, vector<1x16x64xf32> -> vector<1x16x64xf32>
    "tpu.trace_stop"() : () -> ()
    %48 = vector.shape_cast %47 : vector<1x16x64xf32> to vector<16x64xf32>
    %49 = vector.shape_cast %45 : vector<1x16x1xf32> to vector<16x1xf32>
    %50 = tpu.reciprocal %49 {approx = true} : vector<16x1xf32> -> vector<16x1xf32>
    %51 = vector.broadcast %50 : vector<16x1xf32> to vector<16x64xf32>
    %52 = arith.mulf %48, %51 : vector<16x64xf32>
    %53 = vector.broadcast %15 : f32 to vector<16x64xf32>
    %54 = arith.mulf %53, %52 : vector<16x64xf32>
    %55 = arith.addf %54, %26 : vector<16x64xf32>
    %cst_17 = arith.constant 0.000000e+00 : f32
    %56 = vector.broadcast %cst_17 : f32 to vector<16x64xf32>
    %57 = arith.maximumf %55, %56 : vector<16x64xf32>
    %c0_18 = arith.constant 0 : index
    %c0_19 = arith.constant 0 : index
    %c0_20 = arith.constant 0 : index
    %58 = vector.load %arg6[%c0_18, %c0_19, %c0_20] : memref<1x192x64xbf16, #tpu.memory_space<vmem>>, vector<1x192x64xbf16>
    %59 = vector.shape_cast %58 : vector<1x192x64xbf16> to vector<192x64xbf16>
    %c0_21 = arith.constant 0 : index
    %c0_22 = arith.constant 0 : index
    %c0_23 = arith.constant 0 : index
    %60 = vector.load %arg7[%c0_21, %c0_22, %c0_23] : memref<1x1x64xf32, #tpu.memory_space<vmem>>, vector<1x1x64xf32>
    %61 = vector.shape_cast %60 : vector<1x1x64xf32> to vector<1x64xf32>
    %c0_24 = arith.constant 0 : index
    %c0_25 = arith.constant 0 : index
    %c0_26 = arith.constant 0 : index
    %62 = vector.load %arg8[%c0_24, %c0_25, %c0_26] : memref<1x64x80xbf16, #tpu.memory_space<vmem>>, vector<1x64x80xbf16>
    %63 = vector.shape_cast %62 : vector<1x64x80xbf16> to vector<64x80xbf16>
    %c0_27 = arith.constant 0 : index
    %c0_28 = arith.constant 0 : index
    %c0_29 = arith.constant 0 : index
    %64 = vector.load %arg9[%c0_27, %c0_28, %c0_29] : memref<1x1x80xf32, #tpu.memory_space<vmem>>, vector<1x1x80xf32>
    %65 = vector.shape_cast %64 : vector<1x1x80xf32> to vector<1x80xf32>
    %c1 = arith.constant 1 : index
    %66 = memref.load %arg10[%c1] : memref<2xf32, #tpu.memory_space<smem>>
    %c1_i32_30 = arith.constant 1 : i32
    %67 = tpu.dynamic_rotate %57 by %c1_i32_30 dim 0 : vector<16x64xf32>, i32 -> vector<16x64xf32>
    %68 = vector.broadcast %6 : vector<16x1xf32> to vector<16x64xf32>
    %69 = arith.mulf %67, %68 : vector<16x64xf32>
    %c15_i32_31 = arith.constant 15 : i32
    %70 = tpu.dynamic_rotate %57 by %c15_i32_31 dim 0 : vector<16x64xf32>, i32 -> vector<16x64xf32>
    %71 = vector.broadcast %10 : vector<16x1xf32> to vector<16x64xf32>
    %72 = arith.mulf %70, %71 : vector<16x64xf32>
    %73 = tpu.concatenate %69, %57, %72 in 1 : vector<16x64xf32>, vector<16x64xf32>, vector<16x64xf32> -> vector<16x192xf32>
    %74 = arith.truncf %73 : vector<16x192xf32> to vector<16x192xbf16>
    %cst_32 = arith.constant dense<0.000000e+00> : vector<16x64xf32>
    %75 = tpu.matmul %74, %59, %cst_32 {dimension_numbers = #tpu.dot_dimension_numbers<[1], [0], [0], [1], [0, 0, 1, 1], [], []>} : vector<16x192xbf16>, vector<192x64xbf16>, vector<16x64xf32> -> vector<16x64xf32>
    %76 = vector.broadcast %61 : vector<1x64xf32> to vector<16x64xf32>
    %77 = arith.addf %75, %76 : vector<16x64xf32>
    %78 = arith.truncf %77 : vector<16x64xf32> to vector<16x64xbf16>
    %cst_33 = arith.constant dense<0.000000e+00> : vector<16x80xf32>
    %79 = tpu.matmul %78, %63, %cst_33 {dimension_numbers = #tpu.dot_dimension_numbers<[1], [0], [0], [1], [0, 0, 1, 1], [], []>} : vector<16x64xbf16>, vector<64x80xbf16>, vector<16x80xf32> -> vector<16x80xf32>
    %80 = vector.broadcast %65 : vector<1x80xf32> to vector<16x80xf32>
    %81 = arith.addf %79, %80 : vector<16x80xf32>
    %82 = vector.shape_cast %81 : vector<16x80xf32> to vector<1x16x80xf32>
    %83 = vector.extract_strided_slice %82 {offsets = [0, 0, 0], sizes = [1, 16, 8], strides = [1, 1, 1]} : vector<1x16x80xf32> to vector<1x16x8xf32>
    %84 = arith.truncf %83 : vector<1x16x8xf32> to vector<1x16x8xbf16>
    %85 = vector.extract_strided_slice %82 {offsets = [0, 0, 8], sizes = [1, 16, 8], strides = [1, 1, 1]} : vector<1x16x80xf32> to vector<1x16x8xf32>
    %86 = arith.truncf %85 : vector<1x16x8xf32> to vector<1x16x8xbf16>
    %87 = vector.extract_strided_slice %82 {offsets = [0, 0, 16], sizes = [1, 16, 64], strides = [1, 1, 1]} : vector<1x16x80xf32> to vector<1x16x64xf32>
    %88 = arith.truncf %87 : vector<1x16x64xf32> to vector<1x16x64xbf16>
    "tpu.trace_start"() <{level = 10 : i32, message = "bid,bjd->bij"}> : () -> ()
    %cst_34 = arith.constant dense<0.000000e+00> : vector<1x16x16xf32>
    %89 = tpu.matmul %84, %86, %cst_34 {dimension_numbers = #tpu.dot_dimension_numbers<[2], [2], [1], [1], [0, 0, 0, 1, 1, 1], [0], [0]>} : vector<1x16x8xbf16>, vector<1x16x8xbf16>, vector<1x16x16xf32> -> vector<1x16x16xf32>
    "tpu.trace_stop"() : () -> ()
    %cst_35 = arith.constant dense<0xFF800000> : vector<1x16xf32>
    %90 = vector.multi_reduction <maximumf>, %89, %cst_35 [2] : vector<1x16x16xf32> to vector<1x16xf32>
    %91 = vector.shape_cast %90 : vector<1x16xf32> to vector<1x16x1xf32>
    %92 = vector.broadcast %91 : vector<1x16x1xf32> to vector<1x16x16xf32>
    %93 = arith.subf %89, %92 : vector<1x16x16xf32>
    %94 = math.exp %93 : vector<1x16x16xf32>
    %cst_36 = arith.constant dense<0.000000e+00> : vector<1x16xf32>
    %95 = vector.multi_reduction <add>, %94, %cst_36 [2] : vector<1x16x16xf32> to vector<1x16xf32>
    %96 = vector.shape_cast %95 : vector<1x16xf32> to vector<1x16x1xf32>
    %97 = arith.truncf %94 : vector<1x16x16xf32> to vector<1x16x16xbf16>
    "tpu.trace_start"() <{level = 10 : i32, message = "bij,bjd->bid"}> : () -> ()
    %cst_37 = arith.constant dense<0.000000e+00> : vector<1x16x64xf32>
    %98 = tpu.matmul %97, %88, %cst_37 {dimension_numbers = #tpu.dot_dimension_numbers<[2], [1], [1], [2], [0, 0, 0, 1, 1, 2], [0], [0]>} : vector<1x16x16xbf16>, vector<1x16x64xbf16>, vector<1x16x64xf32> -> vector<1x16x64xf32>
    "tpu.trace_stop"() : () -> ()
    %99 = vector.shape_cast %98 : vector<1x16x64xf32> to vector<16x64xf32>
    %100 = vector.shape_cast %96 : vector<1x16x1xf32> to vector<16x1xf32>
    %101 = tpu.reciprocal %100 {approx = true} : vector<16x1xf32> -> vector<16x1xf32>
    %102 = vector.broadcast %101 : vector<16x1xf32> to vector<16x64xf32>
    %103 = arith.mulf %99, %102 : vector<16x64xf32>
    %104 = vector.broadcast %66 : f32 to vector<16x64xf32>
    %105 = arith.mulf %104, %103 : vector<16x64xf32>
    %106 = arith.addf %105, %77 : vector<16x64xf32>
    %cst_38 = arith.constant 0.000000e+00 : f32
    %107 = vector.broadcast %cst_38 : f32 to vector<16x64xf32>
    %108 = arith.maximumf %106, %107 : vector<16x64xf32>
    %109 = arith.truncf %108 : vector<16x64xf32> to vector<16x64xbf16>
    %c0_39 = arith.constant 0 : index
    %c0_40 = arith.constant 0 : index
    %110 = vector.load %arg11[%c0_39, %c0_40] : memref<64x128xbf16, #tpu.memory_space<vmem>>, vector<64x128xbf16>
    %cst_41 = arith.constant dense<0.000000e+00> : vector<16x128xf32>
    %111 = tpu.matmul %109, %110, %cst_41 {dimension_numbers = #tpu.dot_dimension_numbers<[1], [0], [0], [1], [0, 0, 1, 1], [], []>} : vector<16x64xbf16>, vector<64x128xbf16>, vector<16x128xf32> -> vector<16x128xf32>
    %c0_42 = arith.constant 0 : index
    %c0_43 = arith.constant 0 : index
    %112 = vector.load %arg12[%c0_42, %c0_43] : memref<1x128xf32, #tpu.memory_space<vmem>>, vector<1x128xf32>
    %113 = vector.broadcast %112 : vector<1x128xf32> to vector<16x128xf32>
    %114 = arith.addf %111, %113 : vector<16x128xf32>
    %cst_44 = arith.constant dense<0xFF800000> : vector<16xf32>
    %115 = vector.multi_reduction <maximumf>, %114, %cst_44 [1] : vector<16x128xf32> to vector<16xf32>
    %116 = vector.shape_cast %115 : vector<16xf32> to vector<16x1xf32>
    %117 = vector.broadcast %116 : vector<16x1xf32> to vector<16x128xf32>
    %118 = arith.subf %114, %117 : vector<16x128xf32>
    %119 = math.exp %118 : vector<16x128xf32>
    %cst_45 = arith.constant dense<0.000000e+00> : vector<16xf32>
    %120 = vector.multi_reduction <add>, %119, %cst_45 [1] : vector<16x128xf32> to vector<16xf32>
    %121 = vector.shape_cast %120 : vector<16xf32> to vector<16x1xf32>
    %122 = math.log %121 : vector<16x1xf32>
    %123 = vector.broadcast %122 : vector<16x1xf32> to vector<16x128xf32>
    %124 = arith.subf %118, %123 : vector<16x128xf32>
    %125 = vector.shape_cast %124 : vector<16x128xf32> to vector<1x16x128xf32>
    %c0_46 = arith.constant 0 : index
    %c0_47 = arith.constant 0 : index
    %c0_48 = arith.constant 0 : index
    %126 = vector.load %arg13[%c0_46, %c0_47, %c0_48] : memref<1x16x128xf32, #tpu.memory_space<vmem>>, vector<1x16x128xf32>
    tpu.vector_store %arg13[%c0_46, %c0_47, %c0_48], %125 {strides = array<i32>} : memref<1x16x128xf32, #tpu.memory_space<vmem>>, vector<1x16x128xf32>,
    return
  }
  func.func @transform_0(%arg0: i32) -> (i32, i32, i32) {
    %c0_i32 = arith.constant 0 : i32
    %c0_i32_0 = arith.constant 0 : i32
    %c0_i32_1 = arith.constant 0 : i32
    return %arg0, %c0_i32, %c0_i32_0 : i32, i32, i32
  }
  func.func @transform_1(%arg0: i32) -> (i32, i32) {
    %c0_i32 = arith.constant 0 : i32
    %c0_i32_0 = arith.constant 0 : i32
    %c0_i32_1 = arith.constant 0 : i32
    return %c0_i32, %c0_i32_0 : i32, i32
  }
  func.func @transform_2(%arg0: i32) -> (i32, i32) {
    %c0_i32 = arith.constant 0 : i32
    %c0_i32_0 = arith.constant 0 : i32
    %c0_i32_1 = arith.constant 0 : i32
    return %c0_i32, %c0_i32_0 : i32, i32
  }
  func.func @transform_3(%arg0: i32) -> (i32, i32) {
    %c0_i32 = arith.constant 0 : i32
    %c0_i32_0 = arith.constant 0 : i32
    %c0_i32_1 = arith.constant 0 : i32
    return %c0_i32, %c0_i32_0 : i32, i32
  }
  func.func @transform_4(%arg0: i32) -> (i32, i32) {
    %c0_i32 = arith.constant 0 : i32
    %c0_i32_0 = arith.constant 0 : i32
    %c0_i32_1 = arith.constant 0 : i32
    return %c0_i32, %c0_i32_0 : i32, i32
  }
  func.func @transform_5(%arg0: i32) -> (i32, i32, i32) {
    %c0_i32 = arith.constant 0 : i32
    %c0_i32_0 = arith.constant 0 : i32
    %c0_i32_1 = arith.constant 0 : i32
    %c0_i32_2 = arith.constant 0 : i32
    return %c0_i32, %c0_i32_0, %c0_i32_1 : i32, i32, i32
  }
  func.func @transform_6(%arg0: i32) -> (i32, i32, i32) {
    %c0_i32 = arith.constant 0 : i32
    %c0_i32_0 = arith.constant 0 : i32
    %c0_i32_1 = arith.constant 0 : i32
    %c0_i32_2 = arith.constant 0 : i32
    return %c0_i32, %c0_i32_0, %c0_i32_1 : i32, i32, i32
  }
  func.func @transform_7(%arg0: i32) -> (i32, i32, i32) {
    %c0_i32 = arith.constant 0 : i32
    %c0_i32_0 = arith.constant 0 : i32
    %c0_i32_1 = arith.constant 0 : i32
    %c0_i32_2 = arith.constant 0 : i32
    return %c0_i32, %c0_i32_0, %c0_i32_1 : i32, i32, i32
  }
  func.func @transform_8(%arg0: i32) -> (i32, i32, i32) {
    %c0_i32 = arith.constant 0 : i32
    %c0_i32_0 = arith.constant 0 : i32
    %c0_i32_1 = arith.constant 0 : i32
    %c0_i32_2 = arith.constant 0 : i32
    return %c0_i32, %c0_i32_0, %c0_i32_1 : i32, i32, i32
  }
  func.func @transform_9(%arg0: i32) -> i32 {
    %c0_i32 = arith.constant 0 : i32
    %c0_i32_0 = arith.constant 0 : i32
    return %c0_i32 : i32
  }
  func.func @transform_10(%arg0: i32) -> (i32, i32) {
    %c0_i32 = arith.constant 0 : i32
    %c0_i32_0 = arith.constant 0 : i32
    %c0_i32_1 = arith.constant 0 : i32
    return %c0_i32, %c0_i32_0 : i32, i32
  }
  func.func @transform_11(%arg0: i32) -> (i32, i32) {
    %c0_i32 = arith.constant 0 : i32
    %c0_i32_0 = arith.constant 0 : i32
    %c0_i32_1 = arith.constant 0 : i32
    return %c0_i32, %c0_i32_0 : i32, i32
  }
  func.func @transform_12(%arg0: i32) -> (i32, i32, i32) {
    %c0_i32 = arith.constant 0 : i32
    %c0_i32_0 = arith.constant 0 : i32
    %c0_i32_1 = arith.constant 0 : i32
    return %arg0, %c0_i32, %c0_i32_0 : i32, i32, i32
  }
}

</mosaic_0001>

<bundles_post_ra>
// kernel: rnn_model_forward.1
= control target key start
LH: loop header
LB: loop body
LE: loop exit
PB: predicated region body
PF: predicated region fallthrough
CT: control target
= control target key end

     0   :  { %17 = vsyncpa [#allocation3], 0  ;;  %s1718_s21 = smov 0   ;;  %s1983_s0 = inlined_call_operand.vmem [shape: f32[2,16,32], index: 0, kind: input, shape index: {}]   ;;  %s1984_s1 = inlined_call_operand.vmem [shape: bf16[96,64], index: 1, kind: input, shape index: {}]   ;;  %s1985_s2 = inlined_call_operand.vmem [shape: f32[1,64], index: 2, kind: input, shape index: {}]   ;;  %s1986_s3 = inlined_call_operand.vmem [shape: bf16[64,80], index: 3, kind: input, shape index: {}]   ;;  %s1987_s4 = inlined_call_operand.vmem [shape: f32[1,80], index: 4, kind: input, shape index: {}]   ;;  %s1988_s5 = inlined_call_operand.vmem [shape: bf16[1,192,64], index: 5, kind: input, shape index: {}]   ;;  %s1989_s6 = inlined_call_operand.vmem [shape: f32[1,1,64], index: 6, kind: input, shape index: {}]   ;;  %s1990_s7 = inlined_call_operand.vmem [shape: bf16[1,64,80], index: 7, kind: input, shape index: {}]   ;;  %s1991_s8 = inlined_call_operand.vmem [shape: f32[1,1,80], index: 8, kind: input, shape index: {}]   ;;  %s1992_s9 = inlined_call_operand.vmem [shape: f32[2], index: 9, kind: input, shape index: {}]   ;;  %s1993_s10 = inlined_call_operand.vmem [shape: bf16[64,128], index: 10, kind: input, shape index: {}]   ;;  %s1994_s11 = inlined_call_operand.vmem [shape: f32[1,128], index: 11, kind: input, shape index: {}]   ;;  %s1995_s12 = inlined_call_operand.vmem [shape: f32[2,16,128], index: 12, kind: output, shape index: {}]  }
   0x1 LB: > { %s1724_s22 = sadd.s32 4294967295, %s1643_s21   ;;  %p1357_p0 = scmp.ge.s32.totalorder %s1643_s21, 1  ;;  %s1643_s21 = sphi %s1718_s21, %s23_s21  }
   0x2   : > { %p311_p1 = scmp.lt.s32.totalorder %s1643_s21, 3  ;;  %s348_s25 = sshll.u32 %s1992_s9, 4  ;;  %s349_s25 = int_to_ptr.vmem [resolvable:$true] %s348_s25 }
   0x3   : > { %p1531_p3 = scmp.eq.s32.totalorder %s1724_s22, 0  ;;  %s1618_s27 = scalar_lea.vmem %s349_s25, 16 }
   0x4   : > { %p1731_p2 = pnand %p1357_p0, %p311_p1  ;;  %p1619_p6 = scmp.ne.s32.totalorder %s349_s25, %s1618_s27 }
   0x5   : > { %p1626_p10 = scmp.lt.s32.totalorder %s349_s25, %s349_s25  ;;  %p1627_p11 = scmp.lt.s32.totalorder %s1618_s27, %s1618_s27 }
   0x6   : > { %p1527_p4 = pneg %p1731_p2 }
   0x7   : > { %p1628_p12 = por %p1627_p11, %p1626_p10 }
   0x8   : > { %p1528_p5 = pnand %p1531_p3, %p1527_p4 }
   0xa   : > { %p1620_p7 = pneg %p1528_p5 }
   0xc   : > { %p1621_p8 = pnand %p1620_p7, %p1619_p6 }
   0xe   : > { %p1622_p9 = pneg %p1621_p8 }
  0x10   : > { %p1629_p13 = pnand %p1628_p12, %p1622_p9 }
  0x12   : > { %1632 = shalt.err (!%p1629_p13)
}
  0x13   : > { %s1645_s28 = smov [#allocation2]   ;;  %375 = sbr.rel (%p1731_p2) target bundleno = 2969 (0xb99), region = 68 }
  0x14   : > { %1530 = dma.vmem_to_smem (!%p1528_p5), %s349_s25, 16, %s1645_s28, [#allocation3]  }
  0x18   : > { %1638 = dma.done.wait (%p1531_p3), [#allocation3], 16  }
  0x19   : > { %1640 = vsyncadd (%p1531_p3), [#allocation3], 4294967280 }
  0x1a   : > { %381 = sfence }
  0x1b   : > { %p418_p0 = scmp.lt.s32.totalorder %s1724_s22, 1  ;;  %v431_v0 = vlaneseq  ;;  %v1564_v1 = vld [vmem:[%s1984_s1 + $0x28] sm:$0xff]   ;;  %v1646_v2 = vmov 0.0   ;;  %v1565_v3 = vld [vmem:[%s1984_s1 + $0x20] sm:$0xff]   ;;  %v1566_v8 = vld [vmem:[%s1984_s1 + $0x18] sm:$0xff]   ;;  %s1647_s23 = smov 32  }
  0x1c   : > { %1447 = vmatprep.subr.bf16.mxu0 %v1646_v2  ;;  %1463 = vmatprep.subr.bf16.mxu1 %v1646_v2  ;;  %vm1648_vm3 = vmmov 0   ;;  %v1570_v17 = vld [vmem:[%s1986_s3 + $0x18] sm:$0xff]   ;;  %v1567_v20 = vld [vmem:[%s1984_s1 + $0x10] sm:$0xff]   ;;  %v1568_v23 = vld [vmem:[%s1984_s1 + $0x8] sm:$0xff]   ;;  %s1649_s14 = smov 64   ;;  %vm499_vm5 = vcmask 261120  }
  0x1d   : > { %s1998_s22 = smov (!%p418_p0, %s1724_s22), 1  ;;  %v1758_v4 = vshrl.u32 %v431_v0, 7  ;;  %1448 = vmatpush3.bf16.msra.mxu0 %v1564_v1  ;;  %1459 = vmatprep.mubr.msk.bf16.mxu0 %vm1648_vm3, %v1646_v2  ;;  %v1571_v22 = vld [vmem:[%s1986_s3 + $0x10] sm:$0xff]   ;;  %v1569_v25 = vld [vmem:[%s1984_s1] sm:$0xff]   ;;  %vm502_vm6 = vcmask 523264   ;;  %vm548_vm7 = vcmask 785408  }
  0x1e   : > { %1449 = vmatprep.subr.bf16.mxu0 %v1646_v2  ;;  %s1415_s15 = sshll.u32 %s1998_s22, 4  ;;  %1471 = vmatprep.mubr.msk.bf16.mxu1 %vm1648_vm3, %v1646_v2  ;;  %v1572_v39 = vld [vmem:[%s1986_s3 + $0x8] sm:$0xff]   ;;  %v1573_v40 = vld [vmem:[%s1986_s3] sm:$0xff]   ;;  %s1650_s28 = smov 120   ;;  %vm672_vm8 = vcmask 64512   ;;  %vm720_vm9 = vcmask 130048  }
  0x1f   : > { %v433_v5 = vadd.s32 8, %v1758_v4  ;;  %s422_s18 = scalar_lea.vmem %s1983_s0, %s1415_s15  ;;  %vm471_vm0 = vcmp.lt.s32.totalorder %v1758_v4, 1  ;;  %vm478_vm2 = vcmp.lt.s32.totalorder %v1758_v4, 7  ;;  %1464 = vmatpush3.bf16.msra.mxu1 %v1570_v17  ;;  %vm434_vm4 = vcmp.ne.s32.totalorder %v1758_v4, 0  ;;  %v1368_v42 = vld [vmem:[%s1985_s2] ss:$0 sm:$0xff] }
  0x20   : > { %v429_v6 = vld [vmem:[%s422_s18] sm:$0xff]  ;;  %v430_v7 = vld [vmem:[%s422_s18 + $0x8] sm:$0xff]  ;;  %1465 = vmatprep.subr.bf16.mxu1 %v1646_v2  ;;  %v1814_v27 = vsel %vm434_vm4, 1.0, %v1646_v2  ;;  %s1651_s29 = smov 112   ;;  %v1652_v17 = vmov 0   ;;  %s468_s26 = sld [smem:[#allocation2]] }
  0x21   : > { %vm441_vm1 = vcmp.ne.s32.totalorder %v433_v5, 15  ;;  %1450 = vmatpush3.bf16.msra.mxu0 %v1565_v3  ;;  %v470_v9 = vrot.slane %v430_v7, 7  ;;  %v477_v10 = vrot.slane %v430_v7, 1  ;;  %v1549_v11 = vpack.i.bf16 %v430_v7, %v429_v6  ;;  %v1376_v50 = vld [vmem:[%s1987_s4] ss:$0 sm:$0xff]  ;;  %s1384_s19 = sld [smem:[#allocation2 + $0x1]] }
  0x22   : > { %v469_v12 = vrot.slane %v429_v6, 7  ;;  %1451 = vmatprep.subr.bf16.mxu0 %v1646_v2  ;;  %v476_v13 = vrot.slane %v429_v6, 1  ;;  %v1775_v14 = vsel %vm441_vm1, 1.0, %v1646_v2  ;;  %v1589_v4 = vld [vmem:[%s1990_s7] sm:$0xff]  }
  0x23   : > { %1550 = vrot.lane.b32.xlu0 %v1549_v11, %s1647_s23  ;;  %1466 = vmatpush3.bf16.msra.mxu1 %v1571_v22  ;;  %v1579_v22 = vld [vmem:[%s1988_s5 + $0x10] sm:$0xff]  }
  0x24   : > { %v473_v15 = vsel %vm471_vm0, %v470_v9, %v469_v12  ;;  %v472_v16 = vsel %vm471_vm0, %v469_v12, %v470_v9  ;;  %v479_v18 = vsel %vm478_vm2, %v476_v13, %v477_v10  ;;  %v480_v19 = vsel %vm478_vm2, %v477_v10, %v476_v13  ;;  %1467 = vmatprep.subr.bf16.mxu1 %v1646_v2 }
  0x25   : > { %1452 = vmatpush3.bf16.msra.mxu0 %v1566_v8  ;;  %v482_v21 = vmul.f32 %v1775_v14, %v480_v19  ;;  %v474_v30 = vmul.f32 %v1814_v27, %v473_v15  ;;  %v1576_v19 = vld [vmem:[%s1988_s5 + $0x28] sm:$0xff]  }
  0x26   : > { %1453 = vmatprep.subr.bf16.mxu0 %v1646_v2 }
  0x27   : > { %v1554_v24 = vpack.i.bf16 %v482_v21, %v479_v18  ;;  %1468 = vmatpush3.bf16.msra.mxu1 %v1572_v39  ;;  %v1575_v18 = vld [vmem:[%s1988_s5 + $0x30] sm:$0xff]   ;;  %v1578_v21 = vld [vmem:[%s1988_s5 + $0x18] sm:$0xff]  }
  0x28   : > { %1469 = vmatprep.subr.bf16.mxu1 %v1646_v2 }
  0x29   : > { %1454 = vmatpush3.bf16.msra.mxu0 %v1567_v20  ;;  %1555 = vrot.lane.b32.xlu0 %v1554_v24, %s1649_s14  ;;  %v1577_v20 = vld [vmem:[%s1988_s5 + $0x20] sm:$0xff]  }
  0x2a   : > { %1455 = vmatprep.subr.bf16.mxu0 %v1646_v2  ;;  %v1581_v24 = vld [vmem:[%s1988_s5] sm:$0xff]  }
  0x2b   : > { %1470 = vmatpush3.bf16.msra.mxu1 %v1573_v40 }
  0x2c   : > { %1475 = vmatprep.subr.bf16.mxu1 %v1646_v2 }
  0x2d   : > { %1456 = vmatpush3.bf16.msra.mxu0 %v1568_v23  ;;  %v1580_v23 = vld [vmem:[%s1988_s5 + $0x8] sm:$0xff]  }
  0x2e   : > { %1457 = vmatprep.subr.bf16.mxu0 %v1646_v2 }
  0x31   : > { %1458 = vmatpush3.bf16.msra.mxu0 %v1569_v25  ;;  %v1582_v25 = vld [vmem:[%s1988_s5 + $0x58] sm:$0xff]  }
  0x32   : > { %1481 = vmatprep.subr.bf16.mxu0 %v1646_v2 }
  0x95   : > { %v1551_v26 = vpop.permute.xlu0 %1550 }
  0x96   : > { %v1553_v28 = vunpack.i.h.bf16 %v1551_v26  ;;  %v1552_v29 = vunpack.i.l.bf16 %v1551_v26  ;;  %v1583_v26 = vld [vmem:[%s1988_s5 + $0x50] sm:$0xff]  }
  0x98   : > { %v500_v34 = vsel %vm499_vm5, %v474_v30, %v1552_v29  ;;  %v501_v35 = vsel %vm499_vm5, %v472_v16, %v1553_v28  ;;  %v1574_v16 = vld [vmem:[%s1988_s5 + $0x38] sm:$0xff]   ;;  %v1584_v28 = vld [vmem:[%s1988_s5 + $0x48] sm:$0xff]  }
  0x9b   : > { %v1556_v31 = vpop.permute.xlu0 %1555 }
  0x9c   : > { %v1558_v32 = vunpack.i.h.bf16 %v1556_v31  ;;  %v1557_v33 = vunpack.i.l.bf16 %v1556_v31 }
  0x9e   : > { %v503_v36 = vsel %vm502_vm6, %v500_v34, %v1557_v33  ;;  %v504_v37 = vsel %vm502_vm6, %v501_v35, %v1558_v32  ;;  %v791_v33 = vstv %s468_s26  ;;  %s427_s26 = scalar_lea.vmem %s1995_s12, %s1415_s15 }
  0x9f   : > { %v505_v38 = vpack.c.bf16 %v504_v37, %v503_v36  ;;  %v1585_v36 = vld [vmem:[%s1988_s5 + $0x40] sm:$0xff]  }
  0xa1   : > { %1460 = vmatmul.mubr.msk.bf16.vlgmr.msra.gmra.mxu0 %vm548_vm7, %v505_v38 }
  0xa2   : > { %1483 = vmatprep.mubr.msk.bf16.mxu0 %vm1648_vm3, %v1646_v2 }
 0x161   : > { %v586_v41 = vpop.f32.mrf.mxu0 }
 0x162   : > { %v1832_v45 = vadd.f32 %v1368_v42, %v586_v41 }
 0x163   : > { %v1461_v43 = vpop.f32.mrf.mxu0 }
 0x165   : > { %v589_v44 = vpop.f32.mrf.mxu0 }
 0x166   : > { %v1834_v46 = vadd.f32 %v1368_v42, %v589_v44  ;;  %v1586_v44 = vld [vmem:[%s1990_s7 + $0x18] sm:$0xff]  }
 0x167   : > { %v1462_v47 = vpop.f32.mrf.mxu0 }
 0x168   : > { %v593_v48 = vpack.c.bf16 %v1834_v46, %v1832_v45 }
 0x16a   : > { %1472 = vmatmul.mubr.msk.bf16.vlgmr.msra.gmra.mxu1 %vm502_vm6, %v593_v48 }
 0x16b   : > { %1477 = vmatprep.mubr.msk.bf16.mxu1 %vm1648_vm3, %v1646_v2 }
 0x22a   : > { %v661_v49 = vpop.f32.mrf.mxu1 }
 0x22b   : > { %v662_v53 = vadd.f32 %v1376_v50, %v661_v49  ;;  %v1587_v49 = vld [vmem:[%s1990_s7 + $0x10] sm:$0xff]  }
 0x22c   : > { %v1473_v51 = vpop.f32.mrf.mxu1 }
 0x22e   : > { %v664_v52 = vpop.f32.mrf.mxu1 }
 0x22f   : > { %v665_v54 = vadd.f32 %v1376_v50, %v664_v52 }
 0x230   : > { %v1474_v55 = vpop.f32.mrf.mxu1 }
 0x231   : > { %v668_v56 = vpack.c.bf16 %v665_v54, %v662_v53 }
 0x233   : > { %670 = vrot.lane.b32.xlu1 %v668_v56, %s1650_s28 }
 0x2a5   : > { %v671_v57 = vpop.permute.xlu1 %670 }
 0x2a6   : > { %v677_v58 = vsel %vm672_vm8, %v671_v57, 0 }
 0x2a7   : > { %1476 = vmatpush3.bf16.xpose.msra.mxu1 %v677_v58 }
 0x2a8   : > { %938 = vmatprep.subr.bf16.mxu1 %v1652_v17 }
 0x2ae   : > { %1478 = vmatmul.mubr.msk.bf16.vlgmr.msra.gmra.mxu1 %vm672_vm8, %v668_v56 }
 0x2af   : > { %939 = vmatpush1.bf16.msra.mxu1 %v1574_v16 }
 0x2b0   : > { %940 = vmatprep.subr.bf16.mxu1 %v1652_v17 }
 0x2b3   : > { %941 = vmatpush1.bf16.msra.mxu1 %v1575_v18 }
 0x2b4   : > { %942 = vmatprep.subr.bf16.mxu1 %v1652_v17 }
 0x2b7   : > { %943 = vmatpush1.bf16.msra.mxu1 %v1576_v19 }
 0x2b8   : > { %944 = vmatprep.subr.bf16.mxu1 %v1652_v17 }
 0x2bb   : > { %945 = vmatpush1.bf16.msra.mxu1 %v1577_v20 }
 0x2bc   : > { %946 = vmatprep.subr.bf16.mxu1 %v1652_v17 }
 0x2bf   : > { %947 = vmatpush1.bf16.msra.mxu1 %v1578_v21 }
 0x2c0   : > { %948 = vmatprep.subr.bf16.mxu1 %v1652_v17 }
 0x2c3   : > { %949 = vmatpush1.bf16.msra.mxu1 %v1579_v22 }
 0x2c4   : > { %950 = vmatprep.subr.bf16.mxu1 %v1652_v17 }
 0x2c7   : > { %951 = vmatpush1.bf16.msra.mxu1 %v1580_v23 }
 0x2c8   : > { %952 = vmatprep.subr.bf16.mxu1 %v1652_v17 }
 0x2cb   : > { %953 = vmatpush1.bf16.msra.mxu1 %v1581_v24 }
 0x2cc   : > { %962 = vmatprep.subr.bf16.mxu1 %v1652_v17 }
 0x2cf   : > { %963 = vmatpush2.bf16.msra.mxu1 %v1582_v25 }
 0x2d0   : > { %964 = vmatprep.subr.bf16.mxu1 %v1652_v17 }
 0x2d3   : > { %965 = vmatpush2.bf16.msra.mxu1 %v1583_v26 }
 0x2d4   : > { %966 = vmatprep.subr.bf16.mxu1 %v1652_v17 }
 0x2d7   : > { %967 = vmatpush2.bf16.msra.mxu1 %v1584_v28 }
 0x2d8   : > { %968 = vmatprep.subr.bf16.mxu1 %v1652_v17 }
 0x2db   : > { %969 = vmatpush2.bf16.msra.mxu1 %v1585_v36 }
 0x36e   : > { %v713_v59 = vpop.f32.mrf.mxu1 }
 0x36f   : > { %v721_v60 = vsel %vm720_vm9, %v713_v59, -inf }
 0x370   : > { %722 = vmax.xlane.f32.xlu1 %v721_v60  ;;  %v1479_v61 = vpop.f32.mrf.mxu1 }
 0x372   : > { %v716_v62 = vpop.f32.mrf.mxu1 }
 0x373   : > { %v724_v63 = vsel %vm720_vm9, %v716_v62, -inf }
 0x374   : > { %725 = vmax.xlane.f32.xlu0 %v724_v63  ;;  %v1480_v0 = vpop.f32.mrf.mxu1 }
 0x38a   : > { %740 = vrot.lane.b32.xlu0 %v668_v56, %s1651_s29 }
 0x3f9   : > { %v723_v1 = vpop.xlane.xlu1 %722 }
 0x3fa   : > { %v727_v3 = vsub.f32 %v713_v59, %v723_v1 }
 0x3fc   : > { %v729_v5 = vmul.f32 1.442695, %v727_v3 }
 0x3fd   : > { %v726_v6 = vpop.xlane.xlu0 %725 }
 0x3fe   : > { %1594 = vpow2.f32 %v729_v5  ;;  %v728_v7 = vsub.f32 %v716_v62, %v726_v6  ;;  %v1385_v5 = vld [vmem:[%s1989_s6] ss:$0 sm:$0xff] }
 0x400   : > { %v731_v8 = vmul.f32 1.442695, %v728_v7 }
 0x401   : > { %v741_v9 = vpop.permute.xlu0 %740 }
 0x402   : > { %1596 = vpow2.f32 %v731_v8  ;;  %1482 = vmatpush3.bf16.msra.mxu0 %v741_v9 }
 0x403   : > { %1487 = vmatprep.subr.bf16.mxu0 %v1646_v2 }
 0x40b   : > { %v1595_v10 = vpop.eup %1594 }
 0x40c   : > { %v733_v11 = vsel %vm720_vm9, %v1595_v10, 0.0 }
 0x40d   : > { %734 = vadd.xlane.f32.xlu1 %v733_v11 }
 0x40f   : > { %v1597_v12 = vpop.eup %1596 }
 0x410   : > { %v736_v13 = vsel %vm720_vm9, %v1597_v12, 0.0  ;;  %v739_v15 = vpack.c.bf16 %v1597_v12, %v1595_v10 }
 0x411   : > { %737 = vadd.xlane.f32.xlu1 %v736_v13  ;;  %v1399_v13 = vld [vmem:[%s1991_s8] ss:$0 sm:$0xff] }
 0x412   : > { %1484 = vmatmul.mubr.msk.bf16.vlgmr.msra.gmra.mxu0 %vm720_vm9, %v739_v15 }
 0x413   : > { %1495 = vmatprep.mubr.msk.bf16.mxu0 %vm1648_vm3, %v1646_v2  ;;  %1488 = vmatpush3.bf16.msra.mxu0 %v1586_v44  ;;  %v1592_v44 = vld [vmem:[%s1993_s10 + $0x8] sm:$0xff]  }
 0x414   : > { %1489 = vmatprep.subr.bf16.mxu0 %v1646_v2 }
 0x417   : > { %1490 = vmatpush3.bf16.msra.mxu0 %v1587_v49 }
 0x418   : > { %1491 = vmatprep.subr.bf16.mxu0 %v1646_v2 }
 0x496   : > { %v735_v29 = vpop.xlane.xlu1 %734 }
 0x497   : > { %1598 = vrcp.f32 %v735_v29 }
 0x49a   : > { %v738_v30 = vpop.xlane.xlu1 %737 }
 0x49b   : > { %1600 = vrcp.f32 %v738_v30 }
 0x4a4   : > { %v1599_v31 = vpop.eup %1598 }
 0x4a8   : > { %v1601_v38 = vpop.eup %1600 }
 0x4d2   : > { %v780_v32 = vpop.f32.mrf.mxu0 }
 0x4d3   : > { %v789_v34 = vmul.f32 %v1599_v31, %v780_v32 }
 0x4d4   : > { %v1485_v35 = vpop.f32.mrf.mxu0 }
 0x4d5   : > { %v792_v37 = vmul.f32 %v791_v33, %v789_v34 }
 0x4d6   : > { %v783_v39 = vpop.f32.mrf.mxu0 }
 0x4d7   : > { %v794_v40 = vadd.f32 %v792_v37, %v1832_v45  ;;  %v790_v41 = vmul.f32 %v1601_v38, %v783_v39 }
 0x4d8   : > { %v1486_v42 = vpop.f32.mrf.mxu0 }
 0x4d9   : > { %v793_v43 = vmul.f32 %v791_v33, %v790_v41  ;;  %v796_v47 = vmax.f32 %v794_v40, 0.0  ;;  %v1590_v42 = vld [vmem:[%s1993_s10 + $0x18] sm:$0xff]  }
 0x4db   : > { %v795_v48 = vadd.f32 %v793_v43, %v1834_v46  ;;  %v833_v51 = vrot.slane %v796_v47, 7  ;;  %v839_v45 = vrot.slane %v796_v47, 1  ;;  %v1591_v43 = vld [vmem:[%s1993_s10 + $0x10] sm:$0xff]  }
 0x4dd   : > { %v797_v50 = vmax.f32 %v795_v48, 0.0 }
 0x4df   : > { %v834_v52 = vrot.slane %v797_v50, 7  ;;  %v840_v53 = vrot.slane %v797_v50, 1  ;;  %v1559_v54 = vpack.i.bf16 %v797_v50, %v796_v47  ;;  %v1593_v47 = vld [vmem:[%s1993_s10] sm:$0xff]  }
 0x4e1   : > { %1560 = vrot.lane.b32.xlu1 %v1559_v54, %s1649_s14  ;;  %v842_v46 = vsel %vm478_vm2, %v840_v53, %v839_v45  ;;  %v835_v55 = vsel %vm471_vm0, %v833_v51, %v834_v52  ;;  %v836_v56 = vsel %vm471_vm0, %v834_v52, %v833_v51  ;;  %v841_v58 = vsel %vm478_vm2, %v839_v45, %v840_v53 }
 0x4e2   : > { %v844_v57 = vmul.f32 %v1775_v14, %v842_v46  ;;  %v837_v63 = vmul.f32 %v1814_v27, %v836_v56  ;;  %v1588_v14 = vld [vmem:[%s1990_s7 + $0x8] sm:$0xff]   ;;  %v1175_v45 = vstv %s1384_s19 }
 0x4e3   : > { %1492 = vmatpush3.bf16.msra.mxu0 %v1588_v14 }
 0x4e4   : > { %v856_v59 = vpack.c.bf16 %v844_v57, %v841_v58  ;;  %1493 = vmatprep.subr.bf16.mxu0 %v1646_v2 }
 0x4e6   : > { %1398 = vmatprep.mubr.msk.bf16.mxu1 %vm502_vm6, %v856_v59 }
 0x4e7   : > { %1494 = vmatpush3.bf16.msra.mxu0 %v1589_v4 }
 0x4e8   : > { %1499 = vmatprep.subr.bf16.mxu0 %v1646_v2 }
 0x553   : > { %v1561_v60 = vpop.permute.xlu1 %1560 }
 0x554   : > { %v1563_v61 = vunpack.i.h.bf16 %v1561_v60  ;;  %v1562_v62 = vunpack.i.l.bf16 %v1561_v60 }
 0x556   : > { %v853_v0 = vsel %vm502_vm6, %v837_v63, %v1562_v62  ;;  %v854_v1 = vsel %vm502_vm6, %v835_v55, %v1563_v61  ;;  %v1407_v63 = vld [vmem:[%s1994_s11] ss:$0 sm:$0xff] }
 0x557   : > { %v855_v3 = vpack.c.bf16 %v854_v1, %v853_v0 }
 0x559   : > { %971 = vmatmul.mubr.bf16.vlgmr.msra.gmra.mxu1 %v855_v3 }
 0x619   : > { %v972_v27 = vpop.f32.mrf.mxu1 }
 0x61a   : > { %v1927_v8 = vadd.f32 %v1385_v5, %v972_v27 }
 0x61b   : > { %v974_v6 = vpop.f32.mrf.mxu1 }
 0x61d   : > { %v975_v7 = vpop.f32.mrf.mxu1 }
 0x61e   : > { %v1929_v9 = vadd.f32 %v1385_v5, %v975_v7 }
 0x61f   : > { %v977_v10 = vpop.f32.mrf.mxu1 }
 0x620   : > { %v979_v11 = vpack.c.bf16 %v1929_v9, %v1927_v8 }
 0x622   : > { %1496 = vmatmul.mubr.msk.bf16.vlgmr.msra.gmra.mxu0 %vm502_vm6, %v979_v11 }
 0x623   : > { %1501 = vmatprep.mubr.msk.bf16.mxu0 %vm1648_vm3, %v1646_v2 }
 0x6e2   : > { %v1047_v12 = vpop.f32.mrf.mxu0 }
 0x6e3   : > { %v1048_v17 = vadd.f32 %v1399_v13, %v1047_v12 }
 0x6e4   : > { %v1497_v15 = vpop.f32.mrf.mxu0 }
 0x6e6   : > { %v1050_v16 = vpop.f32.mrf.mxu0 }
 0x6e7   : > { %v1051_v18 = vadd.f32 %v1399_v13, %v1050_v16 }
 0x6e8   : > { %v1498_v19 = vpop.f32.mrf.mxu0 }
 0x6e9   : > { %v1054_v20 = vpack.c.bf16 %v1051_v18, %v1048_v17 }
 0x6eb   : > { %1056 = vrot.lane.b32.xlu0 %v1054_v20, %s1650_s28 }
 0x75d   : > { %v1057_v21 = vpop.permute.xlu0 %1056 }
 0x75e   : > { %v1062_v22 = vsel %vm672_vm8, %v1057_v21, 0 }
 0x75f   : > { %1500 = vmatpush3.bf16.xpose.msra.mxu0 %v1062_v22 }
 0x760   : > { %1505 = vmatprep.subr.bf16.mxu0 %v1646_v2 }
 0x766   : > { %1502 = vmatmul.mubr.msk.bf16.vlgmr.msra.gmra.mxu0 %vm672_vm8, %v1054_v20 }
 0x767   : > { %1507 = vmatprep.mubr.msk.bf16.mxu0 %vm1648_vm3, %v1646_v2 }
 0x826   : > { %v1098_v23 = vpop.f32.mrf.mxu0 }
 0x827   : > { %v1105_v24 = vsel %vm720_vm9, %v1098_v23, -inf }
 0x828   : > { %1106 = vmax.xlane.f32.xlu0 %v1105_v24  ;;  %v1503_v25 = vpop.f32.mrf.mxu0 }
 0x82a   : > { %v1101_v26 = vpop.f32.mrf.mxu0 }
 0x82b   : > { %v1108_v28 = vsel %vm720_vm9, %v1101_v26, -inf }
 0x82c   : > { %1109 = vmax.xlane.f32.xlu1 %v1108_v28  ;;  %v1504_v29 = vpop.f32.mrf.mxu0 }
 0x83e   : > { %1124 = vrot.lane.b32.xlu0 %v1054_v20, %s1651_s29 }
 0x8b1   : > { %v1107_v30 = vpop.xlane.xlu0 %1106 }
 0x8b2   : > { %v1111_v31 = vsub.f32 %v1098_v23, %v1107_v30 }
 0x8b4   : > { %v1113_v32 = vmul.f32 1.442695, %v1111_v31 }
 0x8b5   : > { %v1125_v33 = vpop.permute.xlu0 %1124  ;;  %v1110_v34 = vpop.xlane.xlu1 %1109 }
 0x8b6   : > { %1602 = vpow2.f32 %v1113_v32  ;;  %v1112_v35 = vsub.f32 %v1101_v26, %v1110_v34  ;;  %1506 = vmatpush3.bf16.msra.mxu0 %v1125_v33 }
 0x8b7   : > { %1511 = vmatprep.subr.bf16.mxu0 %v1646_v2 }
 0x8b8   : > { %v1115_v36 = vmul.f32 1.442695, %v1112_v35 }
 0x8ba   : > { %1604 = vpow2.f32 %v1115_v36 }
 0x8c3   : > { %v1603_v37 = vpop.eup %1602 }
 0x8c4   : > { %v1117_v38 = vsel %vm720_vm9, %v1603_v37, 0.0 }
 0x8c5   : > { %1118 = vadd.xlane.f32.xlu1 %v1117_v38 }
 0x8c7   : > { %v1605_v39 = vpop.eup %1604 }
 0x8c8   : > { %v1120_v40 = vsel %vm720_vm9, %v1605_v39, 0.0  ;;  %v1123_v41 = vpack.c.bf16 %v1605_v39, %v1603_v37 }
 0x8c9   : > { %1121 = vadd.xlane.f32.xlu1 %v1120_v40 }
 0x8ca   : > { %1508 = vmatmul.mubr.msk.bf16.vlgmr.msra.gmra.mxu0 %vm720_vm9, %v1123_v41 }
 0x8cb   : > { %1519 = vmatprep.mubr.msk.bf16.mxu0 %vm1648_vm3, %v1646_v2  ;;  %1512 = vmatpush3.bf16.msra.mxu0 %v1590_v42 }
 0x8cc   : > { %1513 = vmatprep.subr.bf16.mxu0 %v1646_v2 }
 0x8cf   : > { %1514 = vmatpush3.bf16.msra.mxu0 %v1591_v43 }
 0x8d0   : > { %1515 = vmatprep.subr.bf16.mxu0 %v1646_v2 }
 0x8d3   : > { %1516 = vmatpush3.bf16.msra.mxu0 %v1592_v44 }
 0x8d4   : > { %1517 = vmatprep.subr.bf16.mxu0 %v1646_v2 }
 0x8d7   : > { %1518 = vmatpush3.bf16.msra.mxu0 %v1593_v47 }
 0x94e   : > { %v1119_v48 = vpop.xlane.xlu1 %1118 }
 0x94f   : > { %1606 = vrcp.f32 %v1119_v48 }
 0x952   : > { %v1122_v49 = vpop.xlane.xlu1 %1121 }
 0x953   : > { %1608 = vrcp.f32 %v1122_v49 }
 0x95c   : > { %v1607_v50 = vpop.eup %1606 }
 0x960   : > { %v1609_v46 = vpop.eup %1608 }
 0x98a   : > { %v1164_v51 = vpop.f32.mrf.mxu0 }
 0x98b   : > { %v1173_v52 = vmul.f32 %v1607_v50, %v1164_v51 }
 0x98c   : > { %v1509_v53 = vpop.f32.mrf.mxu0 }
 0x98d   : > { %v1176_v54 = vmul.f32 %v1175_v45, %v1173_v52 }
 0x98e   : > { %v1167_v55 = vpop.f32.mrf.mxu0 }
 0x98f   : > { %v1174_v56 = vmul.f32 %v1609_v46, %v1167_v55  ;;  %v1178_v57 = vadd.f32 %v1176_v54, %v1927_v8 }
 0x990   : > { %v1510_v2 = vpop.f32.mrf.mxu0 }
 0x991   : > { %v1177_v58 = vmul.f32 %v1175_v45, %v1174_v56  ;;  %v1180_v60 = vmax.f32 %v1178_v57, 0.0 }
 0x993   : > { %v1179_v59 = vadd.f32 %v1177_v58, %v1929_v9 }
 0x995   : > { %v1181_v61 = vmax.f32 %v1179_v59, 0.0 }
 0x997   : > { %v1182_v62 = vpack.c.bf16 %v1181_v61, %v1180_v60 }
 0x999   : > { %1520 = vmatmul.mubr.msk.bf16.vlgmr.msra.gmra.mxu0 %vm502_vm6, %v1182_v62 }
 0xa59   : > { %v1259_v0 = vpop.f32.mrf.mxu0 }
 0xa5a   : > { %v1260_v1 = vadd.f32 %v1407_v63, %v1259_v0 }
 0xa5b   : > { %v1521_v3 = vpop.f32.mrf.mxu0 }
 0xa5c   : > { %1266 = vmax.xlane.f32.xlu1 %v1260_v1 }
 0xa5d   : > { %v1262_v14 = vpop.f32.mrf.mxu0 }
 0xa5e   : > { %v1263_v4 = vadd.f32 %v1407_v63, %v1262_v14 }
 0xa5f   : > { %v1522_v27 = vpop.f32.mrf.mxu0 }
 0xa60   : > { %1268 = vmax.xlane.f32.xlu1 %v1263_v4 }
 0xae5   : > { %v1267_v5 = vpop.xlane.xlu1 %1266 }
 0xae6   : > { %v1270_v6 = vsub.f32 %v1260_v1, %v1267_v5 }
 0xae8   : > { %v1272_v7 = vmul.f32 1.442695, %v1270_v6 }
 0xae9   : > { %v1269_v8 = vpop.xlane.xlu1 %1268 }
 0xaea   : > { %1610 = vpow2.f32 %v1272_v7  ;;  %v1271_v9 = vsub.f32 %v1263_v4, %v1269_v8 }
 0xaec   : > { %v1274_v10 = vmul.f32 1.442695, %v1271_v9 }
 0xaee   : > { %1612 = vpow2.f32 %v1274_v10 }
 0xaf7   : > { %v1611_v11 = vpop.eup %1610 }
 0xaf8   : > { %1276 = vadd.xlane.f32.xlu1 %v1611_v11 }
 0xafb   : > { %v1613_v12 = vpop.eup %1612 }
 0xafc   : > { %1278 = vadd.xlane.f32.xlu0 %v1613_v12 }
 0xb81   : > { %v1277_v13 = vpop.xlane.xlu1 %1276 }
 0xb82   : > { %1614 = vlog2.f32 %v1277_v13 }
 0xb85   : > { %v1279_v15 = vpop.xlane.xlu0 %1278 }
 0xb86   : > { %1616 = vlog2.f32 %v1279_v15 }
 0xb8f   : > { %v1615_v16 = vpop.eup %1614 }
 0xb90   : > { %v1281_v17 = vmul.f32 0.6931472, %v1615_v16 }
 0xb92   : > { %v1284_v18 = vsub.f32 %v1270_v6, %v1281_v17 }
 0xb93   : > { %v1617_v19 = vpop.eup %1616 }
 0xb94   : > { %1286 = vst [vmem:[%s427_s26] sm:$0xff] %v1284_v18  ;;  %v1283_v20 = vmul.f32 0.6931472, %v1617_v19 }
 0xb96   : > { %v1285_v21 = vsub.f32 %v1271_v9, %v1283_v20 }
 0xb98   : > { %1287 = vst [vmem:[%s427_s26 + $0x8] sm:$0xff] %v1285_v21 }
 0xb99 PF: > { %s23_s21 = sadd.s32 1, %s1643_s21  }
 0xb9a   : > { %p20_p1 = scmp.ge.s32.totalorder %s23_s21, 4  }
 0xb9c   :  { %22 = sbr.rel (!%p20_p1) target bundleno = 1 (0x1), region = 103 }
 0xba1   :  { %1309 = vsyncpa [#allocation3], 1 }
 0xba2   :  { %1311 = vsyncpa [#allocation3 + $0x1], 1 }

</bundles_post_ra>
